<compile_context>
chip_gen: v7x
topology: tpu7x:2x2x1
jax: 0.10.0
libtpu: 0.0.40
codegen_flags: <defaults>
</compile_context>

<pallas_src>
import math

import jax
import jax.numpy as jnp
from jax import lax
from jax.experimental import pallas as pl
from jax.experimental.pallas import tpu as pltpu

SCORE_LANES = 128  # lane-dense slab width for the pooling score output


def _vmem_spec():
    return pl.BlockSpec(memory_space=pltpu.MemorySpace.VMEM)


def _smem_spec():
    return pl.BlockSpec(memory_space=pltpu.MemorySpace.SMEM)


# --------------------------- Pallas kernels ---------------------------------

def _gnn_layer_kernel(a_ref, x_ref, cw_ref, cb_ref, wp_ref, bp_ref, h_ref, s_ref):
    """Fused GNN layer:
       h = relu( D^-1/2 (A+I) D^-1/2 @ (X @ W_conv) + b_conv )      (GCNConv + ReLU)
       s = tanh( A @ (h @ W_rel) + h @ W_root + b_pool )            (SAGPooling score)
    A is the raw, binary, symmetric adjacency without self loops."""
    n = a_ref.shape[0]
    a = a_ref[...]

    # A_hat = A + I  (identity built from 2-D iotas; no HBM round-trip of A_hat)
    r = lax.broadcasted_iota(jnp.int32, (n, n), 0)
    c = lax.broadcasted_iota(jnp.int32, (n, n), 1)
    a_hat = a + jnp.where(r == c, 1.0, 0.0).astype(a.dtype)

    deg = jnp.sum(a_hat, axis=1, keepdims=True)                       # (N,1), >= 1
    d_inv_sqrt = jnp.where(deg > 0, lax.rsqrt(deg), 0.0)              # (N,1)

    # GCNConv: D^-1/2 A_hat D^-1/2 X W + b   ==  d * (A_hat @ (d * (X @ W))) + b
    xw = jnp.dot(x_ref[...].astype(jnp.bfloat16),
                 cw_ref[...].astype(jnp.bfloat16),
                 preferred_element_type=jnp.float32)                  # (N,H)
    agg = jnp.dot(a_hat.astype(jnp.bfloat16),
                  (xw * d_inv_sqrt).astype(jnp.bfloat16),
                  preferred_element_type=jnp.float32)                 # (N,H)
    h = jnp.maximum(agg * d_inv_sqrt + cb_ref[...], 0.0)              # ReLU
    h_ref[...] = h

    # SAGPooling score GraphConv (out_channels=1):
    #   comb = h @ [W_rel | W_root]  -> (N,2); score = tanh(A @ comb[:,0] + comb[:,1] + b)
    hb = h.astype(jnp.bfloat16)
    comb = jnp.dot(hb, wp_ref[...].astype(jnp.bfloat16),
                   preferred_element_type=jnp.float32)                # (N,2)
    nbr = jnp.dot(a.astype(jnp.bfloat16), comb.astype(jnp.bfloat16),
                  preferred_element_type=jnp.float32)                 # (N,2)
    col = lax.broadcasted_iota(jnp.int32, (n, 2), 1)
    sel = jnp.where(col == 0, nbr, comb)                              # col0: A@(h@Wr), col1: h@Wo
    score = jnp.tanh(jnp.sum(sel, axis=-1, keepdims=True) + bp_ref[0])  # (N,1)
    # lane-dense slab output (avoids masked 1-lane stores)
    s_ref[...] = jnp.broadcast_to(score, s_ref.shape)


def gnn_layer(a, x, cw, cb, wp, bp):
    n = x.shape[0]
    h_dim = cw.shape[1]
    vm = _vmem_spec()
    return pl.pallas_call(
        _gnn_layer_kernel,
        in_specs=[vm, vm, vm, vm, vm, _smem_spec()],
        out_specs=(_vmem_spec(), _vmem_spec()),
        out_shape=(jax.ShapeDtypeStruct((n, h_dim), jnp.float32),
                   jax.ShapeDtypeStruct((n, SCORE_LANES), jnp.float32)),
    )(a, x, cw, cb, wp, bp)


def _lin_logsoftmax_kernel(x_ref, w_ref, b_ref, o_ref):
    # final ConvGNN Linear + log_softmax(dim=1)
    h = jnp.dot(x_ref[...].astype(jnp.bfloat16),
                w_ref[...].astype(jnp.bfloat16),
                preferred_element_type=jnp.float32) + b_ref[...]
    m = jnp.max(h, axis=-1, keepdims=True)
    s = h - m
    lse = jnp.log(jnp.sum(jnp.exp(s), axis=-1, keepdims=True))
    o_ref[...] = s - lse


def lin_logsoftmax(x, w, b):
    n = x.shape[0]
    vm = _vmem_spec()
    return pl.pallas_call(
        _lin_logsoftmax_kernel,
        in_specs=[vm, vm, vm],
        out_specs=_vmem_spec(),
        out_shape=jax.ShapeDtypeStruct((n, w.shape[1]), jnp.float32),
    )(x, w, b)


def _make_fc_fused_kernel(n_blocks):
    """Whole FC head in one kernel: n_blocks x (Linear -> Dropout(id) -> LayerNorm -> ReLU)
    followed by the final Linear."""
    def kernel(*refs):
        x_ref = refs[0]
        o_ref = refs[-1]
        p = refs[1:-1]
        h = x_ref[...]
        for i in range(n_blocks):
            w, b, g, bt = p[4 * i], p[4 * i + 1], p[4 * i + 2], p[4 * i + 3]
            z = jnp.dot(h.astype(jnp.bfloat16), w[...].astype(jnp.bfloat16),
                        preferred_element_type=jnp.float32) + b[...]
            # TODO(synk): nn.Dropout(p=0.5) train-mode stochastic masking is treated as identity (eval semantics).
            mu = jnp.mean(z, axis=-1, keepdims=True)
            var = jnp.mean(jnp.square(z - mu), axis=-1, keepdims=True)
            zn = (z - mu) * lax.rsqrt(var + 1e-5)
            h = jnp.maximum(zn * g[...] + bt[...], 0.0)
        wf, bf = p[4 * n_blocks], p[4 * n_blocks + 1]
        o_ref[...] = jnp.dot(h.astype(jnp.bfloat16), wf[...].astype(jnp.bfloat16),
                             preferred_element_type=jnp.float32) + bf[...]
    return kernel


def fc_forward(params, vec):
    h = vec.reshape(1, -1)
    blocks = params["blocks"]
    flat = []
    for w, b, g, bt in blocks:
        flat.extend([w, b, g, bt])
    wf, bf = params["final"]
    flat.extend([wf, bf])
    vm_list = [_vmem_spec() for _ in range(1 + len(flat))]
    out = pl.pallas_call(
        _make_fc_fused_kernel(len(blocks)),
        in_specs=vm_list,
        out_specs=_vmem_spec(),
        out_shape=jax.ShapeDtypeStruct((1, wf.shape[1]), jnp.float32),
    )(h, *flat)
    return out.reshape(-1)


# ------------------------------ glue (JAX) -----------------------------------

def _linear_init(key, fan_in, fan_out):
    kw, kb = jax.random.split(key)
    bound = 1.0 / math.sqrt(fan_in)
    w = jax.random.uniform(kw, (fan_in, fan_out), jnp.float32, -bound, bound)
    b = jax.random.uniform(kb, (1, fan_out), jnp.float32, -bound, bound)
    return w, b


def init_convgnn(key, in_channels=45, hidden_channels=128, out_channels=128, num_layers=4):
    params = {"convs": [], "pools": []}
    keys = jax.random.split(key, 2 * num_layers + 1)
    for i in range(num_layers):
        in_dim = in_channels if i == 0 else hidden_channels
        cw, cb = _linear_init(keys[2 * i], in_dim, hidden_channels)
        params["convs"].append((cw, cb))
        k1, k2 = jax.random.split(keys[2 * i + 1])
        wr, br = _linear_init(k1, hidden_channels, 1)   # GraphConv lin_rel (with bias)
        wo, _ = _linear_init(k2, hidden_channels, 1)    # GraphConv lin_root (no bias)
        wp = jnp.concatenate([wr, wo], axis=1)          # (H, 2): [W_rel | W_root]
        params["pools"].append((wp, br.reshape(1)))     # scalar bias -> SMEM
    params["lin"] = _linear_init(keys[-1], hidden_channels, out_channels)
    return params


def convgnn_forward(params, x, a, ratio=0.5):
    for (cw, cb), (wp, bp) in zip(params["convs"], params["pools"]):
        n = x.shape[0]
        h, s_slab = gnn_layer(a, x, cw, cb, wp, bp)        # fused layer (Pallas)
        score = s_slab[:, 0]                               # (N,)
        k = int(math.ceil(ratio * n))                      # SAGPooling top-k (plain JAX)
        top_scores, perm = lax.top_k(score, k)
        x = h[perm] * top_scores[:, None]                  # gate kept nodes by tanh score
        a = a[perm][:, perm]                               # induced subgraph
    lw, lb = params["lin"]
    return lin_logsoftmax(x, lw, lb)                       # Linear + log_softmax (Pallas)


def init_fc(key, d_in=256, d_out=256, fc_nlayers=4):
    dims = [int(d_in + (d_out - d_in) * i / fc_nlayers) for i in range(fc_nlayers + 1)]
    keys = jax.random.split(key, fc_nlayers)
    blocks = []
    for i in range(fc_nlayers - 1):
        w, b = _linear_init(keys[i], dims[i], dims[i + 1])
        gamma = jnp.ones((1, dims[i + 1]), jnp.float32)
        beta = jnp.zeros((1, dims[i + 1]), jnp.float32)
        blocks.append((w, b, gamma, beta))
    final = _linear_init(keys[-1], dims[-2], d_out)
    return {"blocks": blocks, "final": final}


OUT_CHANNELS = 128


def net_forward(params, gp, sp):
    if gp is None:
        out1 = jnp.zeros((OUT_CHANNELS,), jnp.float32)
    else:
        out1 = convgnn_forward(params["gp_gnn"], gp[0], gp[1])
    out2 = convgnn_forward(params["sp_gnn"], sp[0], sp[1])
    concat = jnp.concatenate([out1, out2.reshape(-1)])
    return fc_forward(params["fc"], concat)


# ------------------------------ demo -----------------------------------------

if __name__ == "__main__":
    key = jax.random.PRNGKey(0)
    k_gp, k_sp, k_fc, k_x, k_adj = jax.random.split(key, 5)

    params = {
        "gp_gnn": init_convgnn(k_gp),
        "sp_gnn": init_convgnn(k_sp),
        "fc": init_fc(k_fc),
    }

    # sp graph: 16 nodes, 45 input channels, random symmetric adjacency (no self loops).
    N, IN_CH = 16, 45
    x_sp = jax.random.normal(k_x, (N, IN_CH), dtype=jnp.float32)
    u = jax.random.uniform(k_adj, (N, N))
    a_sp = (u < 0.3).astype(jnp.float32)
    a_sp = jnp.maximum(a_sp, a_sp.T) * (1.0 - jnp.eye(N, dtype=jnp.float32))

    # gp is None (matches the only consistent branch of Net.forward's torch.concatenate).
    out = net_forward(params, None, (x_sp, a_sp))
    out = jax.block_until_ready(out)
    assert out.shape == (256,) and out.dtype == jnp.float32
    assert bool(jnp.all(jnp.isfinite(out)))
    print("KERNEL_OK")
</pallas_src>

<mosaic_0001>
module attributes {stable_mosaic.version = 11 : i64} {
  func.func @_gnn_layer_kernel(%arg0: memref<16x16xf32, #tpu.memory_space<vmem>>, %arg1: memref<16x45xf32, #tpu.memory_space<vmem>>, %arg2: memref<45x128xf32, #tpu.memory_space<vmem>>, %arg3: memref<1x128xf32, #tpu.memory_space<vmem>>, %arg4: memref<128x2xf32, #tpu.memory_space<vmem>>, %arg5: memref<1xf32, #tpu.memory_space<smem>>, %arg6: memref<16x128xf32, #tpu.memory_space<vmem>>, %arg7: memref<16x128xf32, #tpu.memory_space<vmem>>) attributes {dimension_semantics = [], scalar_prefetch = 0 : i64, scratch_operands = 0 : i64, tpu.core_type = #tpu.core_type<tc>} {
    %c0 = arith.constant 0 : index
    %c0_0 = arith.constant 0 : index
    %0 = vector.load %arg0[%c0, %c0_0] : memref<16x16xf32, #tpu.memory_space<vmem>>, vector<16x16xf32>
    %1 = tpu.iota {dimensions = array<i32: 0>} : vector<16x16xi32>
    %2 = tpu.iota {dimensions = array<i32: 1>} : vector<16x16xi32>
    %3 = arith.cmpi eq, %1, %2 : vector<16x16xi32>
    %cst = arith.constant 1.000000e+00 : f32
    %cst_1 = arith.constant 0.000000e+00 : f32
    %4 = vector.broadcast %cst : f32 to vector<16x16xf32>
    %5 = vector.broadcast %cst_1 : f32 to vector<16x16xf32>
    %6 = arith.select %3, %4, %5 : vector<16x16xi1>, vector<16x16xf32>
    %7 = arith.addf %0, %6 : vector<16x16xf32>
    %cst_2 = arith.constant dense<0.000000e+00> : vector<16xf32>
    %8 = vector.multi_reduction <add>, %7, %cst_2 [1] : vector<16x16xf32> to vector<16xf32>
    %9 = vector.shape_cast %8 : vector<16xf32> to vector<16x1xf32>
    %cst_3 = arith.constant 0.000000e+00 : f32
    %10 = vector.broadcast %cst_3 : f32 to vector<16x1xf32>
    %11 = arith.cmpf ogt, %9, %10 : vector<16x1xf32>
    %12 = math.rsqrt %9 : vector<16x1xf32>
    %cst_4 = arith.constant 0.000000e+00 : f32
    %13 = vector.broadcast %cst_4 : f32 to vector<16x1xf32>
    %14 = arith.select %11, %12, %13 : vector<16x1xi1>, vector<16x1xf32>
    %c0_5 = arith.constant 0 : index
    %c0_6 = arith.constant 0 : index
    %15 = vector.load %arg1[%c0_5, %c0_6] : memref<16x45xf32, #tpu.memory_space<vmem>>, vector<16x45xf32>
    %16 = arith.truncf %15 : vector<16x45xf32> to vector<16x45xbf16>
    %c0_7 = arith.constant 0 : index
    %c0_8 = arith.constant 0 : index
    %17 = vector.load %arg2[%c0_7, %c0_8] : memref<45x128xf32, #tpu.memory_space<vmem>>, vector<45x128xf32>
    %18 = arith.truncf %17 : vector<45x128xf32> to vector<45x128xbf16>
    %cst_9 = arith.constant dense<0.000000e+00> : vector<16x128xf32>
    %19 = tpu.matmul %16, %18, %cst_9 {dimension_numbers = #tpu.dot_dimension_numbers<[1], [0], [0], [1], [0, 0, 1, 1], [], []>} : vector<16x45xbf16>, vector<45x128xbf16>, vector<16x128xf32> -> vector<16x128xf32>
    %20 = arith.truncf %7 : vector<16x16xf32> to vector<16x16xbf16>
    %21 = vector.broadcast %14 : vector<16x1xf32> to vector<16x128xf32>
    %22 = arith.mulf %19, %21 : vector<16x128xf32>
    %23 = arith.truncf %22 : vector<16x128xf32> to vector<16x128xbf16>
    %cst_10 = arith.constant dense<0.000000e+00> : vector<16x128xf32>
    %24 = tpu.matmul %20, %23, %cst_10 {dimension_numbers = #tpu.dot_dimension_numbers<[1], [0], [0], [1], [0, 0, 1, 1], [], []>} : vector<16x16xbf16>, vector<16x128xbf16>, vector<16x128xf32> -> vector<16x128xf32>
    %25 = vector.broadcast %14 : vector<16x1xf32> to vector<16x128xf32>
    %26 = arith.mulf %24, %25 : vector<16x128xf32>
    %c0_11 = arith.constant 0 : index
    %c0_12 = arith.constant 0 : index
    %27 = vector.load %arg3[%c0_11, %c0_12] : memref<1x128xf32, #tpu.memory_space<vmem>>, vector<1x128xf32>
    %28 = vector.broadcast %27 : vector<1x128xf32> to vector<16x128xf32>
    %29 = arith.addf %26, %28 : vector<16x128xf32>
    %cst_13 = arith.constant 0.000000e+00 : f32
    %30 = vector.broadcast %cst_13 : f32 to vector<16x128xf32>
    %31 = arith.maximumf %29, %30 : vector<16x128xf32>
    %c0_14 = arith.constant 0 : index
    %c0_15 = arith.constant 0 : index
    %32 = vector.load %arg6[%c0_14, %c0_15] : memref<16x128xf32, #tpu.memory_space<vmem>>, vector<16x128xf32>
    tpu.vector_store %arg6[%c0_14, %c0_15], %31 {strides = array<i32>} : memref<16x128xf32, #tpu.memory_space<vmem>>, vector<16x128xf32>,
    %33 = arith.truncf %31 : vector<16x128xf32> to vector<16x128xbf16>
    %c0_16 = arith.constant 0 : index
    %c0_17 = arith.constant 0 : index
    %34 = vector.load %arg4[%c0_16, %c0_17] : memref<128x2xf32, #tpu.memory_space<vmem>>, vector<128x2xf32>
    %35 = arith.truncf %34 : vector<128x2xf32> to vector<128x2xbf16>
    %cst_18 = arith.constant dense<0.000000e+00> : vector<16x2xf32>
    %36 = tpu.matmul %33, %35, %cst_18 {dimension_numbers = #tpu.dot_dimension_numbers<[1], [0], [0], [1], [0, 0, 1, 1], [], []>} : vector<16x128xbf16>, vector<128x2xbf16>, vector<16x2xf32> -> vector<16x2xf32>
    %37 = arith.truncf %0 : vector<16x16xf32> to vector<16x16xbf16>
    %38 = arith.truncf %36 : vector<16x2xf32> to vector<16x2xbf16>
    %cst_19 = arith.constant dense<0.000000e+00> : vector<16x2xf32>
    %39 = tpu.matmul %37, %38, %cst_19 {dimension_numbers = #tpu.dot_dimension_numbers<[1], [0], [0], [1], [0, 0, 1, 1], [], []>} : vector<16x16xbf16>, vector<16x2xbf16>, vector<16x2xf32> -> vector<16x2xf32>
    %40 = tpu.iota {dimensions = array<i32: 1>} : vector<16x2xi32>
    %c0_i32 = arith.constant 0 : i32
    %41 = vector.broadcast %c0_i32 : i32 to vector<16x2xi32>
    %42 = arith.cmpi eq, %40, %41 : vector<16x2xi32>
    %43 = arith.select %42, %39, %36 : vector<16x2xi1>, vector<16x2xf32>
    %cst_20 = arith.constant dense<0.000000e+00> : vector<16xf32>
    %44 = vector.multi_reduction <add>, %43, %cst_20 [1] : vector<16x2xf32> to vector<16xf32>
    %45 = vector.shape_cast %44 : vector<16xf32> to vector<16x1xf32>
    %c0_21 = arith.constant 0 : index
    %46 = memref.load %arg5[%c0_21] : memref<1xf32, #tpu.memory_space<smem>>
    %47 = vector.broadcast %46 : f32 to vector<16x1xf32>
    %48 = arith.addf %45, %47 : vector<16x1xf32>
    %49 = math.tanh %48 : vector<16x1xf32>
    %50 = vector.shape_cast %49 : vector<16x1xf32> to vector<16x1xf32>
    %51 = vector.broadcast %50 : vector<16x1xf32> to vector<16x128xf32>
    %c0_22 = arith.constant 0 : index
    %c0_23 = arith.constant 0 : index
    %52 = vector.load %arg7[%c0_22, %c0_23] : memref<16x128xf32, #tpu.memory_space<vmem>>, vector<16x128xf32>
    tpu.vector_store %arg7[%c0_22, %c0_23], %51 {strides = array<i32>} : memref<16x128xf32, #tpu.memory_space<vmem>>, vector<16x128xf32>,
    return
  }
}

</mosaic_0001>

<bundles_post_ra>
// kernel: tpu_custom_call.1
= control target key start
LH: loop header
LB: loop body
LE: loop exit
PB: predicated region body
PF: predicated region fallthrough
CT: control target
= control target key end

     0   :  { %14 = vsyncpa [#allocation4], 0  ;;  %vm71_vm0 = vcmask 1045504   ;;  %vm72_vm1 = vcmask 1046528   ;;  %v31_v3 = vlaneseq  ;;  %v470_v4 = vmov 0.0   ;;  %s675_s0 = inlined_call_operand.vmem [shape: f32[16,16], index: 0, kind: input, shape index: {}]   ;;  %s676_s1 = inlined_call_operand.vmem [shape: f32[16,45], index: 1, kind: input, shape index: {}]   ;;  %s677_s2 = inlined_call_operand.vmem [shape: f32[45,128], index: 2, kind: input, shape index: {}]   ;;  %s678_s3 = inlined_call_operand.vmem [shape: f32[1,128], index: 3, kind: input, shape index: {}]   ;;  %s679_s4 = inlined_call_operand.vmem [shape: f32[128,2], index: 4, kind: input, shape index: {}]   ;;  %s680_s5 = inlined_call_operand.<no memory space> [shape: f32[1], index: 5, kind: input, shape index: {}]   ;;  %s681_s6 = inlined_call_operand.hbm [shape: f32[16,128], index: 6, kind: output, shape index: {0}]   ;;  %s682_s7 = inlined_call_operand.hbm [shape: f32[16,128], index: 7, kind: output, shape index: {1}]  }
   0x1   :  { %v58_v0 = vld [vmem:[%s677_s2] sm:$0xff]  ;;  %v59_v1 = vld [vmem:[%s677_s2 + $0x8] sm:$0xff]  ;;  %v60_v2 = vld [vmem:[%s677_s2 + $0x10] sm:$0xff]  ;;  %365 = vmatprep.subr.bf16.mxu0 %v470_v4  ;;  %381 = vmatprep.subr.bf16.mxu1 %v470_v4  ;;  %v471_v9 = vmov 65535   ;;  %vm472_vm2 = vmmov 0  }
   0x2   :  { %v64_v5 = vpack.c.bf16 %v59_v1, %v58_v0  ;;  %v61_v6 = vld [vmem:[%s677_s2 + $0x18] sm:$0xff]  ;;  %v62_v7 = vld [vmem:[%s677_s2 + $0x20] sm:$0xff]  ;;  %v63_v8 = vld [vmem:[%s677_s2 + $0x28] sm:$0x1f]  ;;  %v73_v10 = vsel %vm71_vm0, 4294967295, %v471_v9  ;;  %371 = vmatprep.mubr.msk.bf16.mxu0 %vm472_vm2, %v470_v4  ;;  %397 = vmatprep.mubr.msk.bf16.mxu1 %vm472_vm2, %v470_v4  ;;  %v32_v14 = vshrl.u32 %v31_v3, 7 }
   0x3   :  { %v65_v11 = vpack.c.bf16 %v61_v6, %v60_v2  ;;  %v66_v12 = vpack.c.bf16 %v63_v8, %v62_v7  ;;  %v544_v13 = vld [vmem:[%s675_s0] sm:$0xff]  ;;  %v546_v15 = vand.u32 127, %v31_v3  ;;  %v551_v16 = vld [vmem:[%s675_s0 + $0x8] sm:$0xff] }
   0x4   :  { %366 = vmatpush3.bf16.msra.mxu0 %v64_v5 }
   0x5   :  { %15 = vsyncpa [#allocation6], 0  ;;  %367 = vmatprep.subr.bf16.mxu0 %v470_v4  ;;  %v74_v17 = vsel %vm72_vm1, %v73_v10, 0  ;;  %v248_v18 = vpack.c.bf16 %v551_v16, %v544_v13  ;;  %vm36_vm3 = vcmp.eq.s32.totalorder %v32_v14, %v546_v15  ;;  %v33_v19 = vadd.s32 8, %v32_v14  ;;  %v55_v22 = vld [vmem:[%s676_s1] sm:$0xff]  ;;  %v56_v23 = vld [vmem:[%s676_s1 + $0x8] sm:$0xff] }
   0x6   :  { %v38_v20 = vsel %vm36_vm3, 1.0, %v470_v4  ;;  %vm42_vm4 = vcmask 130048   ;;  %v76_v21 = vand.u32 %v74_v17, %v66_v12  ;;  %v57_v28 = vpack.c.bf16 %v56_v23, %v55_v22  ;;  %v183_v31 = vld [vmem:[%s679_s4] sm:$0xff]  ;;  %v184_v32 = vld [vmem:[%s679_s4 + $0x8] sm:$0xff]  ;;  %v185_v33 = vld [vmem:[%s679_s4 + $0x10] sm:$0xff] }
   0x7   :  { %v40_v24 = vadd.f32 %v38_v20, %v544_v13  ;;  %vm37_vm5 = vcmp.eq.s32.totalorder %v33_v19, %v546_v15  ;;  %vm67_vm6 = vcmask 367616   ;;  %v199_v34 = vpack.c.bf16 %v184_v32, %v183_v31  ;;  %v186_v35 = vld [vmem:[%s679_s4 + $0x18] sm:$0xff]  ;;  %v187_v37 = vld [vmem:[%s679_s4 + $0x20] sm:$0xff]  ;;  %v188_v38 = vld [vmem:[%s679_s4 + $0x28] sm:$0xff] }
   0x8   :  { %368 = vmatpush3.bf16.msra.mxu0 %v65_v11  ;;  %v39_v25 = vsel %vm37_vm5, 1.0, %v470_v4  ;;  %v200_v36 = vpack.c.bf16 %v186_v35, %v185_v33  ;;  %v201_v39 = vpack.c.bf16 %v188_v38, %v187_v37  ;;  %v189_v40 = vld [vmem:[%s679_s4 + $0x30] sm:$0xff]  ;;  %v190_v41 = vld [vmem:[%s679_s4 + $0x38] sm:$0xff]  ;;  %v191_v43 = vld [vmem:[%s679_s4 + $0x40] sm:$0xff]  ;;  %vm294_vm9 = vcmp.eq.s32.totalorder %v546_v15, 0 }
   0x9   :  { %369 = vmatprep.subr.bf16.mxu0 %v470_v4  ;;  %v43_v26 = vsel %vm42_vm4, %v40_v24, 0.0  ;;  %v41_v27 = vadd.f32 %v39_v25, %v551_v16  ;;  %382 = vmatpush3.bf16.msra.mxu1 %v199_v34  ;;  %v202_v42 = vpack.c.bf16 %v190_v41, %v189_v40  ;;  %v192_v44 = vld [vmem:[%s679_s4 + $0x48] sm:$0xff]  ;;  %v193_v59 = vld [vmem:[%s679_s4 + $0x50] sm:$0xff]  ;;  %v194_v60 = vld [vmem:[%s679_s4 + $0x58] sm:$0xff]  ;;  %vm297_vm10 = vcmask 15360  }
   0xa   :  { %44 = vadd.xlane.f32.xlu0 %v43_v26  ;;  %383 = vmatprep.subr.bf16.mxu1 %v470_v4  ;;  %v203_v45 = vpack.c.bf16 %v192_v44, %v191_v43  ;;  %v204_v61 = vpack.c.bf16 %v194_v60, %v193_v59  ;;  %v195_v62 = vld [vmem:[%s679_s4 + $0x60] sm:$0xff]  ;;  %v196_v63 = vld [vmem:[%s679_s4 + $0x68] sm:$0xff]  ;;  %v197_v1 = vld [vmem:[%s679_s4 + $0x70] sm:$0xff] }
   0xb   :  { %v46_v29 = vsel %vm42_vm4, %v41_v27, 0.0  ;;  %v119_v30 = vpack.c.bf16 %v41_v27, %v40_v24  ;;  %v205_v0 = vpack.c.bf16 %v196_v63, %v195_v62  ;;  %v198_v2 = vld [vmem:[%s679_s4 + $0x78] sm:$0xff]  ;;  %v346_v6 = vld [vmem:[%s678_s3] ss:$0 sm:$0xff]  ;;  %s473_s3 = smov [#allocation3]  }
   0xc   :  { %370 = vmatpush3.bf16.msra.mxu0 %v76_v21  ;;  %v206_v3 = vpack.c.bf16 %v198_v2, %v197_v1  ;;  %s317_s4 = sshll.u32 %s473_s3, 4  ;;  %s318_s4 = int_to_ptr.vmem [resolvable:$true] %s317_s4 }
   0xd   :  { %375 = vmatprep.subr.bf16.mxu0 %v470_v4  ;;  %384 = vmatpush3.bf16.msra.mxu1 %v200_v36  ;;  %s422_s26 = scalar_lea.vmem %s318_s4, 256  ;;  %p427_p1 = scmp.lt.s32.totalorder %s318_s4, %s318_s4 }
   0xe   :  { %47 = vadd.xlane.f32.xlu0 %v46_v29  ;;  %385 = vmatprep.subr.bf16.mxu1 %v470_v4  ;;  %p423_p0 = scmp.ne.s32.totalorder %s318_s4, %s422_s26  ;;  %p428_p2 = scmp.lt.s32.totalorder %s422_s26, %s422_s26 }
   0xf   :  { %372 = vmatmul.mubr.msk.bf16.vlgmr.msra.gmra.mrb[0].mxu0 %vm67_vm6, %v57_v28 }
  0x10   :  { %377 = vmatprep.mubr.msk.bf16.mxu0 %vm472_vm2, %v470_v4  ;;  %p429_p3 = por %p428_p2, %p427_p1 }
  0x11   :  { %386 = vmatpush3.bf16.msra.mxu1 %v201_v39 }
  0x12   :  { %387 = vmatprep.subr.bf16.mxu1 %v470_v4  ;;  %p430_p4 = pnand %p429_p3, %p423_p0 }
  0x15   :  { %388 = vmatpush3.bf16.msra.mxu1 %v202_v42 }
  0x16   :  { %389 = vmatprep.subr.bf16.mxu1 %v470_v4 }
  0x19   :  { %390 = vmatpush3.bf16.msra.mxu1 %v203_v45 }
  0x1a   :  { %391 = vmatprep.subr.bf16.mxu1 %v470_v4 }
  0x1d   :  { %392 = vmatpush3.bf16.msra.mxu1 %v204_v61 }
  0x1e   :  { %393 = vmatprep.subr.bf16.mxu1 %v470_v4 }
  0x21   :  { %394 = vmatpush3.bf16.msra.mxu1 %v205_v0 }
  0x22   :  { %395 = vmatprep.subr.bf16.mxu1 %v470_v4 }
  0x25   :  { %396 = vmatpush3.bf16.msra.mxu1 %v206_v3 }
  0x97   :  { %v45_v46 = vpop.xlane.xlu0 %44 }
  0x98   :  { %414 = vrsqrt.f32 %v45_v46  ;;  %vm49_vm7 = vcmp.gt.f32.partialorder %v45_v46, 0.0 }
  0x9b   :  { %v48_v47 = vpop.xlane.xlu0 %47 }
  0x9c   :  { %416 = vrsqrt.f32 %v48_v47  ;;  %vm50_vm8 = vcmp.gt.f32.partialorder %v48_v47, 0.0 }
  0xa2   :  { %v415_v48 = vpop.eup %414 }
  0xa3   :  { %v53_v52 = vsel %vm49_vm7, %v415_v48, 0.0 }
  0xa6   :  { %v417_v49 = vpop.eup %416 }
  0xa7   :  { %v54_v53 = vsel %vm50_vm8, %v417_v49, 0.0 }
  0xe2   :  { %v112_v50 = vpop.f32.mrb[0].mxu0 }
  0xe3   :  { %v373_v51 = vpop.f32.mrb[1].mxu0  ;;  %v120_v55 = vmul.f32 %v112_v50, %v53_v52 }
  0xe4   :  { %v115_v54 = vpop.f32.mrb[2].mxu0 }
  0xe5   :  { %v121_v56 = vmul.f32 %v115_v54, %v54_v53  ;;  %v374_v57 = vpop.f32.mrb[3].mxu0 }
  0xe7   :  { %v122_v58 = vpack.c.bf16 %v121_v56, %v120_v55 }
  0xe9   :  { %376 = vmatpush3.bf16.msra.mxu0 %v122_v58 }
  0xea   :  { %401 = vmatprep.subr.bf16.mxu0 %v470_v4 }
  0xec   :  { %378 = vmatmul.mubr.msk.bf16.vlgmr.msra.gmra.mrb[4].mxu0 %vm42_vm4, %v119_v30 }
  0xed   :  { %403 = vmatprep.mubr.msk.bf16.mxu0 %vm472_vm2, %v470_v4 }
 0x1bf   :  { %v160_v5 = vpop.f32.mrb[4].mxu0 }
 0x1c0   :  { %v167_v7 = vmul.f32 %v160_v5, %v53_v52  ;;  %v379_v8 = vpop.f32.mrb[5].mxu0 }
 0x1c1   :  { %v163_v9 = vpop.f32.mrb[6].mxu0 }
 0x1c2   :  { %v176_v10 = vadd.f32 %v346_v6, %v167_v7  ;;  %v168_v4 = vmul.f32 %v163_v9, %v54_v53  ;;  %v380_v11 = vpop.f32.mrb[7].mxu0 }
 0x1c4   :  { %v178_v12 = vmax.f32 %v176_v10, 0.0  ;;  %v177_v14 = vadd.f32 %v346_v6, %v168_v4 }
 0x1c6   :  { %180 = vst [vmem:[#allocation3] sm:$0xff] %v178_v12  ;;  %v179_v17 = vmax.f32 %v177_v14, 0.0 }
 0x1c8   :  { %181 = vst [vmem:[#allocation3 + $0x8] sm:$0xff] %v179_v17  ;;  %v182_v19 = vpack.c.bf16 %v179_v17, %v178_v12 }
 0x1ca   :  { %398 = vmatmul.mubr.bf16.vlgmr.msra.gmra.mrb[0].mxu1 %v182_v19 }
 0x29d   :  { %v241_v20 = vpop.f32.mrb[0].mxu1 }
 0x29e   :  { %v399_v21 = vpop.f32.mrb[1].mxu1 }
 0x29f   :  { %v244_v22 = vpop.f32.mrb[2].mxu1 }
 0x2a0   :  { %v249_v23 = vpack.c.bf16 %v244_v22, %v241_v20  ;;  %v400_v24 = vpop.f32.mrb[3].mxu1 }
 0x2a2   :  { %402 = vmatpush3.bf16.msra.mxu0 %v249_v23 }
 0x2a5   :  { %404 = vmatmul.mubr.msk.bf16.vlgmr.msra.gmra.mrb[8].mxu0 %vm42_vm4, %v248_v18 }
 0x378   :  { %v287_v25 = vpop.f32.mrb[8].mxu0 }
 0x379   :  { %v405_v26 = vpop.f32.mrb[9].mxu0  ;;  %v295_v27 = vsel %vm294_vm9, %v287_v25, %v241_v20 }
 0x37a   :  { %v290_v28 = vpop.f32.mrb[10].mxu0  ;;  %v298_v29 = vsel %vm297_vm10, %v295_v27, 0.0 }
 0x37b   :  { %299 = vadd.xlane.f32.xlu1 %v298_v29  ;;  %v406_v30 = vpop.f32.mrb[11].mxu0  ;;  %v296_v31 = vsel %vm294_vm9, %v290_v28, %v244_v22 }
 0x37c   :  { %v301_v32 = vsel %vm297_vm10, %v296_v31, 0.0 }
 0x37f   :  { %302 = vadd.xlane.f32.xlu1 %v301_v32 }
 0x380   :  { %433 = shalt.err (!%p430_p4)
}
 0x381   :  { %s434_s29 = scalar_lea.hbm %s681_s6, 256 }
 0x382   :  { %p435_p5 = scmp.ne.s32.totalorder %s681_s6, %s434_s29  ;;  %p438_p6 = scmp.lt.u32.totalorder %s434_s29, %s681_s6 }
 0x384   :  { %p440_p7 = pnand %p438_p6, %p435_p5 }
 0x386   :  { %443 = shalt.err (!%p440_p7)
}
 0x387   :  { %s474_s11 = smov 128   ;;  %s475_s12 = smov 8   ;;  %v305_v13 = vstv %s680_s5 }
 0x388   :  { %323 = dma.vmem_to_hbm [thread:$0]  %s318_s4, 256, %s681_s6, [#allocation4], %s474_s11, %s474_s11, %s475_s12  }
 0x389   :  { %s476_s16 = smov [#allocation5]  }
 0x38a   :  { %s329_s17 = sshll.u32 %s476_s16, 4  ;;  %s330_s17 = int_to_ptr.vmem [resolvable:$true] %s329_s17 }
 0x38b   :  { %s444_s0 = scalar_lea.vmem %s330_s17, 256  ;;  %p449_p9 = scmp.lt.s32.totalorder %s330_s17, %s330_s17 }
 0x38c   :  { %p445_p8 = scmp.ne.s32.totalorder %s330_s17, %s444_s0  ;;  %p450_p10 = scmp.lt.s32.totalorder %s444_s0, %s444_s0 }
 0x38e   :  { %p451_p11 = por %p450_p10, %p449_p9 }
 0x390   :  { %p452_p12 = pnand %p451_p11, %p445_p8 }
 0x408   :  { %v300_v15 = vpop.xlane.xlu1 %299 }
 0x409   :  { %v306_v16 = vadd.f32 %v305_v13, %v300_v15 }
 0x40b   :  { %418 = vtanh.f32 %v306_v16 }
 0x40c   :  { %v303_v18 = vpop.xlane.xlu1 %302 }
 0x40d   :  { %v307_v33 = vadd.f32 %v305_v13, %v303_v18 }
 0x40f   :  { %420 = vtanh.f32 %v307_v33 }
 0x415   :  { %v419_v34 = vpop.eup %418 }
 0x416   :  { %310 = vst [vmem:[#allocation5] sm:$0xff] %v419_v34 }
 0x419   :  { %v421_v35 = vpop.eup %420 }
 0x41a   :  { %311 = vst [vmem:[#allocation5 + $0x8] sm:$0xff] %v421_v35 }
 0x41b   :  { %455 = shalt.err (!%p452_p12)
}
 0x41c   :  { %s456_s18 = scalar_lea.hbm %s682_s7, 256 }
 0x41d   :  { %p457_p13 = scmp.ne.s32.totalorder %s682_s7, %s456_s18  ;;  %p460_p0 = scmp.lt.u32.totalorder %s456_s18, %s682_s7 }
 0x41f   :  { %p462_p1 = pnand %p460_p0, %p457_p13 }
 0x421   :  { %465 = shalt.err (!%p462_p1)
}
 0x422   :  { %335 = dma.vmem_to_hbm [thread:$0]  %s330_s17, 256, %s682_s7, [#allocation6], %s474_s11, %s474_s11, %s475_s12  }
 0x423   :  { %466 = dma.done.wait [#allocation4], 256  }
 0x424   :  { %467 = vsyncadd [#allocation4], 4294967040 }
 0x425   :  { %468 = dma.done.wait [#allocation6], 256  }
 0x426   :  { %469 = vsyncadd [#allocation6], 4294967040 }
 0x427   :  { %342 = vsyncpa [#allocation4], 1 }
 0x428   :  { %343 = vsyncpa [#allocation6], 1 }

</bundles_post_ra>
